<compile_context>
chip_gen: v7x
topology: tpu7x:2x2x1
jax: 0.10.0
libtpu: 0.0.40
codegen_flags: <defaults>
</compile_context>

<pallas_src>
import jax
import jax.numpy as jnp
from jax.experimental import pallas as pl
from jax.experimental.pallas import tpu as pltpu


# --------------------------------------------------------------------------
# Kernel
# --------------------------------------------------------------------------
def mmoe_kernel(x_ref, w1_ref, b1_ref, we0_ref, be0_ref, we1_ref, be1_ref,
                wg_ref, bg_ref, easy_ref, hard_ref):
    seg = we0_ref.shape[0]                  # padded hidden width (multiple of 128)

    x = x_ref[...]                          # [TB, Dp] bf16

    # Fused first layers of both experts and both gates: one MXU pass.
    h = jnp.dot(x, w1_ref[...], preferred_element_type=jnp.float32)
    h = jnp.maximum(h + b1_ref[...], 0.0)   # f32 [TB, 3*seg]
    h16 = h.astype(jnp.bfloat16)            # matmul operands in bf16

    # Splits land exactly on 128-lane boundaries (seg % 128 == 0): free views.
    e0 = jnp.maximum(
        jnp.dot(h16[:, :seg], we0_ref[...],
                preferred_element_type=jnp.float32) + be0_ref[...], 0.0)  # [TB, Dp]
    e1 = jnp.maximum(
        jnp.dot(h16[:, seg:2 * seg], we1_ref[...],
                preferred_element_type=jnp.float32) + be1_ref[...], 0.0)  # [TB, Dp]

    # Both gate heads packed as logit differences: softmax over 2 experts is
    # exactly sigmoid(l0 - l1). One tiny matmul -> [TB, 2], two sigmoids.
    gd = jnp.dot(h16[:, 2 * seg:], wg_ref[...],
                 preferred_element_type=jnp.float32) + bg_ref[...]        # [TB, 2]
    g_easy = 1.0 / (1.0 + jnp.exp(-gd[:, 0:1]))   # weight on expert 0, task "easy"
    g_hard = 1.0 / (1.0 + jnp.exp(-gd[:, 1:2]))   # weight on expert 0, task "hard"

    diff = e0 - e1
    # Two lane-dense stores straight from vregs (no concatenate, no extra copy).
    easy_ref[...] = (e1 + g_easy * diff).astype(easy_ref.dtype)
    hard_ref[...] = (e1 + g_hard * diff).astype(hard_ref.dtype)


# --------------------------------------------------------------------------
# Wrapper
# --------------------------------------------------------------------------
def _round_up(x, m):
    return ((x + m - 1) // m) * m


def _pick_tb(B):
    # Single grid step for small batches; otherwise the largest power-of-two
    # divisor <= 1024 (multiple of 16 for bf16 sublane packing).  tb <= 1024
    # keeps per-step VMEM ~30 MiB even at D=1024 (v7x-safe), while tiles of
    # 512-1024 amortize the ~0.35 us per-grid-step overhead on v5e/v6e and
    # give an even, >=2-step grid for v7x's two TensorCores when B > 1024.
    if B <= 1024:
        return B
    for cand in (1024, 512, 256, 128, 64, 32, 16):
        if B % cand == 0:
            return cand
    return B


def mmoe_forward(feature_emb, packed, *, tb=None, out_dtype=jnp.float32):
    """feature_emb: [B, D] float32 (or bf16). Returns (easy_out, hard_out), each [B, D]."""
    B, D = feature_emb.shape
    d, d_pad, seg = packed["d"], packed["d_pad"], packed["seg"]
    assert D == d

    w1, b1 = packed["w1"], packed["b1"]
    we0, be0 = packed["we0"], packed["be0"]
    we1, be1 = packed["we1"], packed["be1"]
    wg, bg = packed["wg"], packed["bg"]

    # Matmul operands in bf16 (cast fuses with the embedding producer).
    x = feature_emb.astype(jnp.bfloat16)
    if d_pad != D:
        # Small-D configs: pad to 128 lanes so every vld/vst is unmasked and
        # the MXU runs with full-K tiles.
        x = jnp.pad(x, ((0, 0), (0, d_pad - D)))

    if tb is None:
        tb = _pick_tb(B)
    assert B % tb == 0
    grid = (B // tb,)

    in_specs = [
        pl.BlockSpec((tb, d_pad), lambda i: (i, 0)),       # batch tile of x (bf16)
        pl.BlockSpec((d_pad, 3 * seg), lambda i: (0, 0)),  # fused layer-1 weight
        pl.BlockSpec((1, 3 * seg), lambda i: (0, 0)),      # fused layer-1 bias
        pl.BlockSpec((seg, d_pad), lambda i: (0, 0)),      # expert-0 layer-2 weight
        pl.BlockSpec((1, d_pad), lambda i: (0, 0)),        # expert-0 layer-2 bias
        pl.BlockSpec((seg, d_pad), lambda i: (0, 0)),      # expert-1 layer-2 weight
        pl.BlockSpec((1, d_pad), lambda i: (0, 0)),        # expert-1 layer-2 bias
        pl.BlockSpec((seg, 2), lambda i: (0, 0)),          # gate logit-diff weight
        pl.BlockSpec((1, 2), lambda i: (0, 0)),            # gate logit-diff bias
    ]
    out_specs = [pl.BlockSpec((tb, d_pad), lambda i: (i, 0)),
                 pl.BlockSpec((tb, d_pad), lambda i: (i, 0))]
    out_shape = (jax.ShapeDtypeStruct((B, d_pad), out_dtype),
                 jax.ShapeDtypeStruct((B, d_pad), out_dtype))

    # Advisory cost estimate so XLA schedules surrounding ops sensibly.
    w_bytes = sum(int(a.size) * a.dtype.itemsize
                  for a in (w1, b1, we0, be0, we1, be1, wg, bg))
    out_itemsize = jnp.dtype(out_dtype).itemsize
    cost = pl.CostEstimate(
        flops=int(2 * B * (d_pad * 3 * seg + 2 * seg * d_pad + 2 * seg)),
        transcendentals=int(2 * B),
        bytes_accessed=int(B * d_pad * 2 + 2 * B * d_pad * out_itemsize + w_bytes),
    )

    easy, hard = pl.pallas_call(
        mmoe_kernel,
        out_shape=out_shape,
        grid_spec=pltpu.PrefetchScalarGridSpec(
            num_scalar_prefetch=0,
            grid=grid,
            in_specs=in_specs,
            out_specs=out_specs,
        ),
        compiler_params=pltpu.CompilerParams(
            dimension_semantics=("parallel",),
            vmem_limit_bytes=48 << 20,   # > 32 MiB scoped default, < v7x 64 MiB phys
        ),
        cost_estimate=cost,
    )(x, w1, b1, we0, be0, we1, be1, wg, bg)

    if d_pad != D:
        easy, hard = easy[:, :D], hard[:, :D]
    return easy, hard


# --------------------------------------------------------------------------
# Parameter init (PyTorch nn.Linear layout: weight [out, in]) + kernel packing
# --------------------------------------------------------------------------
def init_params(key, d):
    ks = jax.random.split(key, 8)
    s = 0.05

    def lin(k, out_dim, in_dim):
        kw, kb = jax.random.split(k)
        return (jax.random.normal(kw, (out_dim, in_dim), jnp.float32) * s,
                jax.random.normal(kb, (out_dim,), jnp.float32) * s)

    p = {}
    p["e0_w1"], p["e0_b1"] = lin(ks[0], d // 2, d)
    p["e0_w2"], p["e0_b2"] = lin(ks[1], d, d // 2)
    p["e1_w1"], p["e1_b1"] = lin(ks[2], d // 2, d)
    p["e1_w2"], p["e1_b2"] = lin(ks[3], d, d // 2)
    p["g0_w1"], p["g0_b1"] = lin(ks[4], d // 4, d)
    p["g0_w2"], p["g0_b2"] = lin(ks[5], 2, d // 4)
    p["g1_w1"], p["g1_b1"] = lin(ks[6], d // 4, d)
    p["g1_w2"], p["g1_b2"] = lin(ks[7], 2, d // 4)
    return p


def pack_params(p, d):
    """One-time packing into kernel layout (hoisted out of the forward path).

    All feature / hidden widths are zero-padded to multiples of 128 lanes, the
    matmul weights are cast to bf16 once, and the two gate heads are packed as
    logit-DIFFERENCE columns (2-way softmax == sigmoid of the logit diff).
    """
    dh, dq = d // 2, d // 4
    d_pad = _round_up(d, 128)
    seg = _round_up(dh, 128)

    # Fused layer-1: columns = [expert0 hid | expert1 hid | gate0+gate1 hid],
    # each segment padded to `seg` so downstream splits are tile-aligned.
    w1 = jnp.zeros((d_pad, 3 * seg), jnp.float32)
    w1 = w1.at[:d, 0:dh].set(p["e0_w1"].T)
    w1 = w1.at[:d, seg:seg + dh].set(p["e1_w1"].T)
    w1 = w1.at[:d, 2 * seg:2 * seg + dq].set(p["g0_w1"].T)
    w1 = w1.at[:d, 2 * seg + dq:2 * seg + 2 * dq].set(p["g1_w1"].T)
    b1 = jnp.zeros((1, 3 * seg), jnp.float32)
    b1 = b1.at[0, 0:dh].set(p["e0_b1"])
    b1 = b1.at[0, seg:seg + dh].set(p["e1_b1"])
    b1 = b1.at[0, 2 * seg:2 * seg + dq].set(p["g0_b1"])
    b1 = b1.at[0, 2 * seg + dq:2 * seg + 2 * dq].set(p["g1_b1"])

    we0 = jnp.zeros((seg, d_pad), jnp.float32).at[:dh, :d].set(p["e0_w2"].T)
    be0 = jnp.zeros((1, d_pad), jnp.float32).at[0, :d].set(p["e0_b2"])
    we1 = jnp.zeros((seg, d_pad), jnp.float32).at[:dh, :d].set(p["e1_w2"].T)
    be1 = jnp.zeros((1, d_pad), jnp.float32).at[0, :d].set(p["e1_b2"])

    # Block-structured gate logit-difference head: col 0 = task "easy",
    # col 1 = task "hard"; rows [:dq] feed gate-0 hidden, [dq:2dq] gate-1 hidden.
    wg = jnp.zeros((seg, 2), jnp.float32)
    wg = wg.at[:dq, 0].set(p["g0_w2"][0] - p["g0_w2"][1])
    wg = wg.at[dq:2 * dq, 1].set(p["g1_w2"][0] - p["g1_w2"][1])
    bg = jnp.array([[p["g0_b2"][0] - p["g0_b2"][1],
                     p["g1_b2"][0] - p["g1_b2"][1]]], jnp.float32)

    return dict(
        w1=w1.astype(jnp.bfloat16), b1=b1,
        we0=we0.astype(jnp.bfloat16), be0=be0,
        we1=we1.astype(jnp.bfloat16), be1=be1,
        wg=wg.astype(jnp.bfloat16), bg=bg,
        d=d, d_pad=d_pad, seg=seg,
    )


# --------------------------------------------------------------------------
# Plain-JAX pieces: embedding lookup (outside kernel) and reference model
# --------------------------------------------------------------------------
def feature_embedding(X, emb_tables):
    # TODO(synk): sparse embedding gather stays in plain XLA, not in the Pallas kernel.
    cols = [jnp.take(tbl, X[:, f], axis=0) for f, tbl in enumerate(emb_tables)]
    return jnp.concatenate(cols, axis=-1)


def mmoe_reference(x, p):
    def expert(x, w1, b1, w2, b2):
        h = jax.nn.relu(x @ w1.T + b1)
        return jax.nn.relu(h @ w2.T + b2)

    def gate(x, w1, b1, w2, b2):
        h = jax.nn.relu(x @ w1.T + b1)
        return jax.nn.softmax(h @ w2.T + b2, axis=-1)

    e0 = expert(x, p["e0_w1"], p["e0_b1"], p["e0_w2"], p["e0_b2"])
    e1 = expert(x, p["e1_w1"], p["e1_b1"], p["e1_w2"], p["e1_b2"])
    g0 = gate(x, p["g0_w1"], p["g0_b1"], p["g0_w2"], p["g0_b2"])
    g1 = gate(x, p["g1_w1"], p["g1_b1"], p["g1_w2"], p["g1_b2"])
    easy = g0[:, 0:1] * e0 + g0[:, 1:2] * e1
    hard = g1[:, 0:1] * e0 + g1[:, 1:2] * e1
    return easy, hard


# --------------------------------------------------------------------------
# Smoke test
# --------------------------------------------------------------------------
if __name__ == "__main__":
    B, NUM_FIELDS, EMB_DIM, VOCAB = 8, 4, 16, 50
    D = NUM_FIELDS * EMB_DIM  # input_dim = sum_emb_out_dim() = 64

    key = jax.random.PRNGKey(0)
    kx, ke, kp = jax.random.split(key, 3)

    X = jax.random.randint(kx, (B, NUM_FIELDS), 0, VOCAB, dtype=jnp.int32)
    emb_keys = jax.random.split(ke, NUM_FIELDS)
    emb_tables = [jax.random.normal(k, (VOCAB, EMB_DIM), jnp.float32) * 0.1
                  for k in emb_keys]
    params = init_params(kp, D)
    packed = pack_params(params, D)     # packed & cast to bf16 once, reused

    feature_emb = feature_embedding(X, emb_tables)      # [B, D]
    easy_out, hard_out = mmoe_forward(feature_emb, packed)
    jax.block_until_ready((easy_out, hard_out))

    r_easy, r_hard = mmoe_reference(feature_emb, params)
    assert easy_out.shape == (B, D) and hard_out.shape == (B, D)
    # bf16 matmul operands (f32 accumulate) => compare against the f32
    # reference with a tolerance that covers bf16 rounding.
    assert jnp.allclose(easy_out, r_easy, atol=1e-2, rtol=1e-2)
    assert jnp.allclose(hard_out, r_hard, atol=1e-2, rtol=1e-2)

    print("KERNEL_OK")
</pallas_src>

<mosaic_0001>
module attributes {stable_mosaic.version = 11 : i64} {
  func.func @mmoe_kernel(%arg0: i32, %arg1: memref<8x128xbf16, #tpu.memory_space<vmem>>, %arg2: memref<128x384xbf16, #tpu.memory_space<vmem>>, %arg3: memref<1x384xf32, #tpu.memory_space<vmem>>, %arg4: memref<128x128xbf16, #tpu.memory_space<vmem>>, %arg5: memref<1x128xf32, #tpu.memory_space<vmem>>, %arg6: memref<128x128xbf16, #tpu.memory_space<vmem>>, %arg7: memref<1x128xf32, #tpu.memory_space<vmem>>, %arg8: memref<128x2xbf16, #tpu.memory_space<vmem>>, %arg9: memref<1x2xf32, #tpu.memory_space<vmem>>, %arg10: memref<8x128xf32, #tpu.memory_space<vmem>>, %arg11: memref<8x128xf32, #tpu.memory_space<vmem>>) attributes {dimension_semantics = [#tpu.dimension_semantics<parallel>], iteration_bounds = array<i64: 1>, scalar_prefetch = 0 : i64, scratch_operands = 0 : i64, tpu.core_type = #tpu.core_type<tc>, window_params = [{transform_indices = @transform_0, window_bounds = array<i64: 8, 128>}, {pipeline_mode = #tpu.pipeline_mode<synchronous>, transform_indices = @transform_1, window_bounds = array<i64: 128, 384>}, {pipeline_mode = #tpu.pipeline_mode<synchronous>, transform_indices = @transform_2, window_bounds = array<i64: 1, 384>}, {pipeline_mode = #tpu.pipeline_mode<synchronous>, transform_indices = @transform_3, window_bounds = array<i64: 128, 128>}, {pipeline_mode = #tpu.pipeline_mode<synchronous>, transform_indices = @transform_4, window_bounds = array<i64: 1, 128>}, {pipeline_mode = #tpu.pipeline_mode<synchronous>, transform_indices = @transform_5, window_bounds = array<i64: 128, 128>}, {pipeline_mode = #tpu.pipeline_mode<synchronous>, transform_indices = @transform_6, window_bounds = array<i64: 1, 128>}, {pipeline_mode = #tpu.pipeline_mode<synchronous>, transform_indices = @transform_7, window_bounds = array<i64: 128, 2>}, {pipeline_mode = #tpu.pipeline_mode<synchronous>, transform_indices = @transform_8, window_bounds = array<i64: 1, 2>}, {transform_indices = @transform_9, window_bounds = array<i64: 8, 128>}, {transform_indices = @transform_10, window_bounds = array<i64: 8, 128>}]} {
    %c0 = arith.constant 0 : index
    %c0_0 = arith.constant 0 : index
    %0 = vector.load %arg1[%c0, %c0_0] : memref<8x128xbf16, #tpu.memory_space<vmem>>, vector<8x128xbf16>
    %c0_1 = arith.constant 0 : index
    %c0_2 = arith.constant 0 : index
    %1 = vector.load %arg2[%c0_1, %c0_2] : memref<128x384xbf16, #tpu.memory_space<vmem>>, vector<128x384xbf16>
    %cst = arith.constant dense<0.000000e+00> : vector<8x384xf32>
    %2 = tpu.matmul %0, %1, %cst {dimension_numbers = #tpu.dot_dimension_numbers<[1], [0], [0], [1], [0, 0, 1, 1], [], []>} : vector<8x128xbf16>, vector<128x384xbf16>, vector<8x384xf32> -> vector<8x384xf32>
    %c0_3 = arith.constant 0 : index
    %c0_4 = arith.constant 0 : index
    %3 = vector.load %arg3[%c0_3, %c0_4] : memref<1x384xf32, #tpu.memory_space<vmem>>, vector<1x384xf32>
    %4 = vector.broadcast %3 : vector<1x384xf32> to vector<8x384xf32>
    %5 = arith.addf %2, %4 : vector<8x384xf32>
    %cst_5 = arith.constant 0.000000e+00 : f32
    %6 = vector.broadcast %cst_5 : f32 to vector<8x384xf32>
    %7 = arith.maximumf %5, %6 : vector<8x384xf32>
    %8 = arith.truncf %7 : vector<8x384xf32> to vector<8x384xbf16>
    %9 = vector.extract_strided_slice %8 {offsets = [0, 0], sizes = [8, 128], strides = [1, 1]} : vector<8x384xbf16> to vector<8x128xbf16>
    %c0_6 = arith.constant 0 : index
    %c0_7 = arith.constant 0 : index
    %10 = vector.load %arg4[%c0_6, %c0_7] : memref<128x128xbf16, #tpu.memory_space<vmem>>, vector<128x128xbf16>
    %cst_8 = arith.constant dense<0.000000e+00> : vector<8x128xf32>
    %11 = tpu.matmul %9, %10, %cst_8 {dimension_numbers = #tpu.dot_dimension_numbers<[1], [0], [0], [1], [0, 0, 1, 1], [], []>} : vector<8x128xbf16>, vector<128x128xbf16>, vector<8x128xf32> -> vector<8x128xf32>
    %c0_9 = arith.constant 0 : index
    %c0_10 = arith.constant 0 : index
    %12 = vector.load %arg5[%c0_9, %c0_10] : memref<1x128xf32, #tpu.memory_space<vmem>>, vector<1x128xf32>
    %13 = vector.broadcast %12 : vector<1x128xf32> to vector<8x128xf32>
    %14 = arith.addf %11, %13 : vector<8x128xf32>
    %cst_11 = arith.constant 0.000000e+00 : f32
    %15 = vector.broadcast %cst_11 : f32 to vector<8x128xf32>
    %16 = arith.maximumf %14, %15 : vector<8x128xf32>
    %17 = vector.extract_strided_slice %8 {offsets = [0, 128], sizes = [8, 128], strides = [1, 1]} : vector<8x384xbf16> to vector<8x128xbf16>
    %c0_12 = arith.constant 0 : index
    %c0_13 = arith.constant 0 : index
    %18 = vector.load %arg6[%c0_12, %c0_13] : memref<128x128xbf16, #tpu.memory_space<vmem>>, vector<128x128xbf16>
    %cst_14 = arith.constant dense<0.000000e+00> : vector<8x128xf32>
    %19 = tpu.matmul %17, %18, %cst_14 {dimension_numbers = #tpu.dot_dimension_numbers<[1], [0], [0], [1], [0, 0, 1, 1], [], []>} : vector<8x128xbf16>, vector<128x128xbf16>, vector<8x128xf32> -> vector<8x128xf32>
    %c0_15 = arith.constant 0 : index
    %c0_16 = arith.constant 0 : index
    %20 = vector.load %arg7[%c0_15, %c0_16] : memref<1x128xf32, #tpu.memory_space<vmem>>, vector<1x128xf32>
    %21 = vector.broadcast %20 : vector<1x128xf32> to vector<8x128xf32>
    %22 = arith.addf %19, %21 : vector<8x128xf32>
    %cst_17 = arith.constant 0.000000e+00 : f32
    %23 = vector.broadcast %cst_17 : f32 to vector<8x128xf32>
    %24 = arith.maximumf %22, %23 : vector<8x128xf32>
    %25 = vector.extract_strided_slice %8 {offsets = [0, 256], sizes = [8, 128], strides = [1, 1]} : vector<8x384xbf16> to vector<8x128xbf16>
    %c0_18 = arith.constant 0 : index
    %c0_19 = arith.constant 0 : index
    %26 = vector.load %arg8[%c0_18, %c0_19] : memref<128x2xbf16, #tpu.memory_space<vmem>>, vector<128x2xbf16>
    %cst_20 = arith.constant dense<0.000000e+00> : vector<8x2xf32>
    %27 = tpu.matmul %25, %26, %cst_20 {dimension_numbers = #tpu.dot_dimension_numbers<[1], [0], [0], [1], [0, 0, 1, 1], [], []>} : vector<8x128xbf16>, vector<128x2xbf16>, vector<8x2xf32> -> vector<8x2xf32>
    %c0_21 = arith.constant 0 : index
    %c0_22 = arith.constant 0 : index
    %28 = vector.load %arg9[%c0_21, %c0_22] : memref<1x2xf32, #tpu.memory_space<vmem>>, vector<1x2xf32>
    %29 = vector.broadcast %28 : vector<1x2xf32> to vector<8x2xf32>
    %30 = arith.addf %27, %29 : vector<8x2xf32>
    %31 = vector.extract_strided_slice %30 {offsets = [0, 0], sizes = [8, 1], strides = [1, 1]} : vector<8x2xf32> to vector<8x1xf32>
    %cst_23 = arith.constant 0.000000e+00 : f32
    %32 = vector.broadcast %cst_23 : f32 to vector<8x1xf32>
    %33 = arith.subf %32, %31 : vector<8x1xf32>
    %34 = math.exp %33 : vector<8x1xf32>
    %cst_24 = arith.constant 1.000000e+00 : f32
    %35 = vector.broadcast %cst_24 : f32 to vector<8x1xf32>
    %36 = arith.addf %35, %34 : vector<8x1xf32>
    %cst_25 = arith.constant 1.000000e+00 : f32
    %37 = vector.broadcast %cst_25 : f32 to vector<8x1xf32>
    %38 = arith.divf %37, %36 : vector<8x1xf32>
    %39 = vector.extract_strided_slice %30 {offsets = [0, 1], sizes = [8, 1], strides = [1, 1]} : vector<8x2xf32> to vector<8x1xf32>
    %cst_26 = arith.constant 0.000000e+00 : f32
    %40 = vector.broadcast %cst_26 : f32 to vector<8x1xf32>
    %41 = arith.subf %40, %39 : vector<8x1xf32>
    %42 = math.exp %41 : vector<8x1xf32>
    %cst_27 = arith.constant 1.000000e+00 : f32
    %43 = vector.broadcast %cst_27 : f32 to vector<8x1xf32>
    %44 = arith.addf %43, %42 : vector<8x1xf32>
    %cst_28 = arith.constant 1.000000e+00 : f32
    %45 = vector.broadcast %cst_28 : f32 to vector<8x1xf32>
    %46 = arith.divf %45, %44 : vector<8x1xf32>
    %47 = arith.subf %16, %24 : vector<8x128xf32>
    %48 = vector.broadcast %38 : vector<8x1xf32> to vector<8x128xf32>
    %49 = arith.mulf %48, %47 : vector<8x128xf32>
    %50 = arith.addf %24, %49 : vector<8x128xf32>
    %c0_29 = arith.constant 0 : index
    %c0_30 = arith.constant 0 : index
    %51 = vector.load %arg10[%c0_29, %c0_30] : memref<8x128xf32, #tpu.memory_space<vmem>>, vector<8x128xf32>
    tpu.vector_store %arg10[%c0_29, %c0_30], %50 {strides = array<i32>} : memref<8x128xf32, #tpu.memory_space<vmem>>, vector<8x128xf32>,
    %52 = vector.broadcast %46 : vector<8x1xf32> to vector<8x128xf32>
    %53 = arith.mulf %52, %47 : vector<8x128xf32>
    %54 = arith.addf %24, %53 : vector<8x128xf32>
    %c0_31 = arith.constant 0 : index
    %c0_32 = arith.constant 0 : index
    %55 = vector.load %arg11[%c0_31, %c0_32] : memref<8x128xf32, #tpu.memory_space<vmem>>, vector<8x128xf32>
    tpu.vector_store %arg11[%c0_31, %c0_32], %54 {strides = array<i32>} : memref<8x128xf32, #tpu.memory_space<vmem>>, vector<8x128xf32>,
    return
  }
  func.func @transform_0(%arg0: i32) -> (i32, i32) {
    %c0_i32 = arith.constant 0 : i32
    %c0_i32_0 = arith.constant 0 : i32
    return %arg0, %c0_i32 : i32, i32
  }
  func.func @transform_1(%arg0: i32) -> (i32, i32) {
    %c0_i32 = arith.constant 0 : i32
    %c0_i32_0 = arith.constant 0 : i32
    %c0_i32_1 = arith.constant 0 : i32
    return %c0_i32, %c0_i32_0 : i32, i32
  }
  func.func @transform_2(%arg0: i32) -> (i32, i32) {
    %c0_i32 = arith.constant 0 : i32
    %c0_i32_0 = arith.constant 0 : i32
    %c0_i32_1 = arith.constant 0 : i32
    return %c0_i32, %c0_i32_0 : i32, i32
  }
  func.func @transform_3(%arg0: i32) -> (i32, i32) {
    %c0_i32 = arith.constant 0 : i32
    %c0_i32_0 = arith.constant 0 : i32
    %c0_i32_1 = arith.constant 0 : i32
    return %c0_i32, %c0_i32_0 : i32, i32
  }
  func.func @transform_4(%arg0: i32) -> (i32, i32) {
    %c0_i32 = arith.constant 0 : i32
    %c0_i32_0 = arith.constant 0 : i32
    %c0_i32_1 = arith.constant 0 : i32
    return %c0_i32, %c0_i32_0 : i32, i32
  }
  func.func @transform_5(%arg0: i32) -> (i32, i32) {
    %c0_i32 = arith.constant 0 : i32
    %c0_i32_0 = arith.constant 0 : i32
    %c0_i32_1 = arith.constant 0 : i32
    return %c0_i32, %c0_i32_0 : i32, i32
  }
  func.func @transform_6(%arg0: i32) -> (i32, i32) {
    %c0_i32 = arith.constant 0 : i32
    %c0_i32_0 = arith.constant 0 : i32
    %c0_i32_1 = arith.constant 0 : i32
    return %c0_i32, %c0_i32_0 : i32, i32
  }
  func.func @transform_7(%arg0: i32) -> (i32, i32) {
    %c0_i32 = arith.constant 0 : i32
    %c0_i32_0 = arith.constant 0 : i32
    %c0_i32_1 = arith.constant 0 : i32
    return %c0_i32, %c0_i32_0 : i32, i32
  }
  func.func @transform_8(%arg0: i32) -> (i32, i32) {
    %c0_i32 = arith.constant 0 : i32
    %c0_i32_0 = arith.constant 0 : i32
    %c0_i32_1 = arith.constant 0 : i32
    return %c0_i32, %c0_i32_0 : i32, i32
  }
  func.func @transform_9(%arg0: i32) -> (i32, i32) {
    %c0_i32 = arith.constant 0 : i32
    %c0_i32_0 = arith.constant 0 : i32
    return %arg0, %c0_i32 : i32, i32
  }
  func.func @transform_10(%arg0: i32) -> (i32, i32) {
    %c0_i32 = arith.constant 0 : i32
    %c0_i32_0 = arith.constant 0 : i32
    return %arg0, %c0_i32 : i32, i32
  }
}

</mosaic_0001>

<bundles_post_ra>
// kernel: tpu_custom_call.1
= control target key start
LH: loop header
LB: loop body
LE: loop exit
PB: predicated region body
PF: predicated region fallthrough
CT: control target
= control target key end

     0   :  { %16 = vsyncpa [#allocation3], 0  ;;  %s1272_s0 = inlined_call_operand.vmem [shape: bf16[8,128], index: 0, kind: input, shape index: {}]   ;;  %s1273_s1 = inlined_call_operand.hbm [shape: bf16[128,384], index: 1, kind: input, shape index: {}]   ;;  %s1274_s2 = inlined_call_operand.vmem [shape: f32[1,384], index: 2, kind: input, shape index: {}]   ;;  %s1275_s3 = inlined_call_operand.vmem [shape: bf16[128,128], index: 3, kind: input, shape index: {}]   ;;  %s1276_s4 = inlined_call_operand.vmem [shape: f32[1,128], index: 4, kind: input, shape index: {}]   ;;  %s1277_s5 = inlined_call_operand.hbm [shape: bf16[128,128], index: 5, kind: input, shape index: {}]   ;;  %s1278_s6 = inlined_call_operand.vmem [shape: f32[1,128], index: 6, kind: input, shape index: {}]   ;;  %s1279_s7 = inlined_call_operand.vmem [shape: bf16[128,2], index: 7, kind: input, shape index: {}]   ;;  %s1280_s8 = inlined_call_operand.vmem [shape: f32[1,2], index: 8, kind: input, shape index: {}]   ;;  %s1281_s9 = inlined_call_operand.hbm [shape: f32[8,128], index: 9, kind: output, shape index: {0}]   ;;  %s1282_s10 = inlined_call_operand.hbm [shape: f32[8,128], index: 10, kind: output, shape index: {1}]  }
   0x1   :  { %17 = vsyncpa [#allocation6], 0 }
   0x2   :  { %18 = vsyncpa [#allocation4], 0 }
   0x3   :  { %19 = vsyncpa [#allocation9], 0  ;;  %s1054_s13 = smov [#allocation2]   ;;  %s958_s17 = scalar_lea.hbm %s1273_s1, 3072 }
   0x4   :  { %s27_s14 = sshll.u32 %s1054_s13, 4  ;;  %p959_p0 = scmp.ne.s32.totalorder %s1273_s1, %s958_s17  ;;  %s28_s14 = int_to_ptr.vmem [resolvable:$true] %s27_s14 }
   0x5   :  { %p962_p1 = scmp.lt.u32.totalorder %s958_s17, %s1273_s1 }
   0x7   :  { %p964_p2 = pnand %p962_p1, %p959_p0 }
   0x9   :  { %967 = shalt.err (!%p964_p2)
}
   0xa   :  { %s968_s22 = scalar_lea.vmem %s28_s14, 3072  ;;  %p973_p4 = scmp.lt.s32.totalorder %s28_s14, %s28_s14 }
   0xb   :  { %p969_p3 = scmp.ne.s32.totalorder %s28_s14, %s968_s22  ;;  %p974_p5 = scmp.lt.s32.totalorder %s968_s22, %s968_s22 }
   0xd   :  { %p975_p6 = por %p974_p5, %p973_p4 }
   0xf   :  { %p976_p7 = pnand %p975_p6, %p969_p3 }
  0x11   :  { %979 = shalt.err (!%p976_p7)
}
  0x12   :  { %s1055_s23 = smov 192   ;;  %s1056_s24 = smov 12  }
  0x13   :  { %33 = dma.hbm_to_vmem [thread:$0]  %s1273_s1, 3072, %s28_s14, [#allocation3], %s1055_s23, %s1055_s23, %s1056_s24  }
  0x14   :  { %s1057_s27 = smov [#allocation5]   ;;  %s980_s11 = scalar_lea.hbm %s1277_s5, 1024 }
  0x15   :  { %s45_s28 = sshll.u32 %s1057_s27, 4  ;;  %p981_p8 = scmp.ne.s32.totalorder %s1277_s5, %s980_s11  ;;  %s46_s28 = int_to_ptr.vmem [resolvable:$true] %s45_s28 }
  0x16   :  { %p984_p9 = scmp.lt.u32.totalorder %s980_s11, %s1277_s5 }
  0x18   :  { %p986_p10 = pnand %p984_p9, %p981_p8 }
  0x1a   :  { %989 = shalt.err (!%p986_p10)
}
  0x1b   :  { %s990_s17 = scalar_lea.vmem %s46_s28, 1024  ;;  %p995_p12 = scmp.lt.s32.totalorder %s46_s28, %s46_s28 }
  0x1c   :  { %p991_p11 = scmp.ne.s32.totalorder %s46_s28, %s990_s17  ;;  %p996_p13 = scmp.lt.s32.totalorder %s990_s17, %s990_s17 }
  0x1e   :  { %p997_p0 = por %p996_p13, %p995_p12 }
  0x20   :  { %p998_p1 = pnand %p997_p0, %p991_p11 }
  0x22   :  { %1001 = shalt.err (!%p998_p1)
}
  0x23   :  { %s1058_s1 = smov 64   ;;  %s1059_s14 = smov 4  }
  0x24   :  { %51 = dma.hbm_to_vmem [thread:$0]  %s1277_s5, 1024, %s46_s28, [#allocation6], %s1058_s1, %s1058_s1, %s1059_s14  }
  0x25   :  { %1046 = dma.done.wait [#allocation3], 3072  }
  0x26   :  { %1047 = vsyncadd [#allocation3], 4294964224 }
  0x27   :  { %1048 = dma.done.wait [#allocation6], 1024  }
  0x28   :  { %1049 = vsyncadd [#allocation6], 4294966272  ;;  %v1060_v0 = vmov 0.0   ;;  %v1061_v1 = vmov 0   ;;  %vm1062_vm0 = vmmov 0   ;;  %v930_v25 = vld [vmem:[%s1275_s3] sm:$0xff]   ;;  %v100_v43 = vlaneseq }
  0x29   :  { %804 = vmatprep.subr.bf16.mxu1 %v1060_v0  ;;  %275 = vmatprep.mubr.bf16.mxu0 %v1061_v1  ;;  %v898_v2 = vld [vmem:[#allocation2 + $0x4] ss:$12 sps:$4 sm:$0xff]   ;;  %v900_v3 = vld [vmem:[#allocation2] ss:$12 sps:$4 sm:$0xff]   ;;  %v901_v4 = vld [vmem:[#allocation2 + $0x1c] ss:$12 sps:$4 sm:$0xff]  }
  0x2a   :  { %820 = vmatprep.mubr.msk.bf16.mxu1 %vm1062_vm0, %v1060_v0  ;;  %896 = vset.pattern.permute.xlu0 %v1061_v1  ;;  %v903_v5 = vld [vmem:[#allocation2 + $0x18] ss:$12 sps:$4 sm:$0xff]   ;;  %v904_v6 = vld [vmem:[#allocation2 + $0x34] ss:$12 sps:$4 sm:$0xff]   ;;  %v906_v7 = vld [vmem:[#allocation2 + $0x30] ss:$12 sps:$4 sm:$0xff]  }
  0x2b   :  { %243 = vmatprep.subr.bf16.mxu0 %v898_v2  ;;  %v907_v8 = vld [vmem:[#allocation2 + $0x4c] ss:$12 sps:$4 sm:$0xff]   ;;  %v909_v9 = vld [vmem:[#allocation2 + $0x48] ss:$12 sps:$4 sm:$0xff]   ;;  %v910_v11 = vld [vmem:[#allocation2 + $0x64] ss:$12 sps:$4 sm:$0xff]  }
  0x2c   :  { %244 = vmatpush1.bf16.msra.mxu0 %v900_v3  ;;  %v922_v10 = vld [vmem:[#allocation2 + $0x8] ss:$12 sps:$4 sm:$0xff]   ;;  %v923_v12 = vld [vmem:[#allocation2 + $0x20] ss:$12 sps:$4 sm:$0xff]   ;;  %v924_v15 = vld [vmem:[#allocation2 + $0x38] ss:$12 sps:$4 sm:$0xff]  }
  0x2d   :  { %245 = vmatprep.subr.bf16.mxu0 %v901_v4  ;;  %805 = vmatpush3.bf16.msra.mxu1 %v922_v10  ;;  %v912_v13 = vld [vmem:[#allocation2 + $0x60] ss:$12 sps:$4 sm:$0xff]   ;;  %v913_v14 = vld [vmem:[#allocation2 + $0x7c] ss:$12 sps:$4 sm:$0xff]   ;;  %v915_v16 = vld [vmem:[#allocation2 + $0x78] ss:$12 sps:$4 sm:$0xff]  }
  0x2e   :  { %806 = vmatprep.subr.bf16.mxu1 %v1060_v0  ;;  %v916_v17 = vld [vmem:[#allocation2 + $0x94] ss:$12 sps:$4 sm:$0xff]   ;;  %v925_v18 = vld [vmem:[#allocation2 + $0x50] ss:$12 sps:$4 sm:$0xff]   ;;  %v919_v20 = vld [vmem:[#allocation2 + $0xac] ss:$12 sps:$4 sm:$0xff]  }
  0x2f   :  { %v918_v19 = vld [vmem:[#allocation2 + $0x90] ss:$12 sps:$4 sm:$0xff]   ;;  %v926_v21 = vld [vmem:[#allocation2 + $0x68] ss:$12 sps:$4 sm:$0xff]   ;;  %v927_v23 = vld [vmem:[#allocation2 + $0x80] ss:$12 sps:$4 sm:$0xff]  }
  0x30   :  { %246 = vmatpush1.bf16.msra.mxu0 %v903_v5  ;;  %v921_v22 = vld [vmem:[#allocation2 + $0xa8] ss:$12 sps:$4 sm:$0xff]   ;;  %v65_v24 = vld [vmem:[%s1272_s0] sm:$0xf]  ;;  %v928_v26 = vld [vmem:[#allocation2 + $0x98] ss:$12 sps:$4 sm:$0xff]  }
  0x31   :  { %247 = vmatprep.subr.bf16.mxu0 %v904_v6  ;;  %807 = vmatpush3.bf16.msra.mxu1 %v923_v12  ;;  %v932_v27 = vld [vmem:[%s1275_s3 + $0x8] sm:$0xff]   ;;  %v929_v28 = vld [vmem:[#allocation2 + $0xb0] ss:$12 sps:$4 sm:$0xff]   ;;  %v931_v30 = vld [vmem:[#allocation5] sm:$0xff]   ;;  %v101_v44 = vshrl.u32 %v100_v43, 7 }
  0x32   :  { %808 = vmatprep.subr.bf16.mxu1 %v1060_v0  ;;  %v934_v29 = vld [vmem:[%s1275_s3 + $0x10] sm:$0xff]   ;;  %v936_v31 = vld [vmem:[%s1275_s3 + $0x18] sm:$0xff]   ;;  %v933_v32 = vld [vmem:[#allocation5 + $0x8] sm:$0xff]  }
  0x33   :  { %v938_v33 = vld [vmem:[%s1275_s3 + $0x20] sm:$0xff]   ;;  %v935_v34 = vld [vmem:[#allocation5 + $0x10] sm:$0xff]   ;;  %v940_v35 = vld [vmem:[%s1275_s3 + $0x28] sm:$0xff]   ;;  %v102_v45 = vsub.s32 0, %v101_v44  ;;  %v106_v47 = vsub.s32 1, %v101_v44  ;;  %v110_v5 = vsub.s32 2, %v101_v44 }
  0x34   :  { %248 = vmatpush1.bf16.msra.mxu0 %v906_v7  ;;  %v937_v36 = vld [vmem:[#allocation5 + $0x18] sm:$0xff]   ;;  %v942_v37 = vld [vmem:[%s1275_s3 + $0x30] sm:$0xff]   ;;  %v939_v38 = vld [vmem:[#allocation5 + $0x20] sm:$0xff]  }
  0x35   :  { %249 = vmatprep.subr.bf16.mxu0 %v907_v8  ;;  %809 = vmatpush3.bf16.msra.mxu1 %v924_v15  ;;  %v941_v39 = vld [vmem:[#allocation5 + $0x28] sm:$0xff]   ;;  %v943_v40 = vld [vmem:[#allocation5 + $0x30] sm:$0xff]   ;;  %v944_v41 = vld [vmem:[%s1275_s3 + $0x38] sm:$0xff]  }
  0x36   :  { %810 = vmatprep.subr.bf16.mxu1 %v1060_v0  ;;  %v945_v42 = vld [vmem:[#allocation5 + $0x38] sm:$0xff]   ;;  %v98_v46 = vld [vmem:[%s1274_s2] sm:$0x7]  ;;  %v947_v61 = vld [vmem:[%s1279_s7 + $0x8] sm:$0xff]  }
  0x37   :  { %v103_v48 = vrot.slane %v98_v46, %v102_v45  ;;  %v107_v49 = vrot.slane %v98_v46, %v106_v47  ;;  %v946_v58 = vld [vmem:[%s1279_s7] sm:$0xff]   ;;  %v948_v1 = vld [vmem:[%s1279_s7 + $0x10] sm:$0xff]   ;;  %v949_v4 = vld [vmem:[%s1279_s7 + $0x18] sm:$0xff]   ;;  %v111_v7 = vrot.slane %v98_v46, %v110_v5 }
  0x38   :  { %250 = vmatpush1.bf16.msra.mxu0 %v909_v9  ;;  %v950_v6 = vld [vmem:[%s1279_s7 + $0x20] sm:$0xff]   ;;  %v951_v8 = vld [vmem:[%s1279_s7 + $0x28] sm:$0xff]   ;;  %v952_v10 = vld [vmem:[%s1279_s7 + $0x30] sm:$0xff]  }
  0x39   :  { %251 = vmatprep.subr.bf16.mxu0 %v910_v11  ;;  %811 = vmatpush3.bf16.msra.mxu1 %v925_v18  ;;  %v953_v12 = vld [vmem:[%s1279_s7 + $0x38] sm:$0xff]   ;;  %v750_v15 = vld [vmem:[%s1278_s6] ss:$0 sm:$0xff] }
  0x3a   :  { %812 = vmatprep.subr.bf16.mxu1 %v1060_v0 }
  0x3c   :  { %252 = vmatpush1.bf16.msra.mxu0 %v912_v13 }
  0x3d   :  { %253 = vmatprep.subr.bf16.mxu0 %v913_v14  ;;  %813 = vmatpush3.bf16.msra.mxu1 %v926_v21  ;;  %v741_v14 = vld [vmem:[%s1276_s4] ss:$0 sm:$0xff]  ;;  %s1064_s4 = smov [#allocation7]  }
  0x3e   :  { %814 = vmatprep.subr.bf16.mxu1 %v1060_v0  ;;  %s693_s6 = sshll.u32 %s1064_s4, 4  ;;  %s694_s6 = int_to_ptr.vmem [resolvable:$true] %s693_s6 }
  0x3f   :  { %s1002_s16 = scalar_lea.vmem %s694_s6, 128  ;;  %p1007_p3 = scmp.lt.s32.totalorder %s694_s6, %s694_s6 }
  0x40   :  { %254 = vmatpush1.bf16.msra.mxu0 %v915_v16  ;;  %p1003_p2 = scmp.ne.s32.totalorder %s694_s6, %s1002_s16  ;;  %p1008_p4 = scmp.lt.s32.totalorder %s1002_s16, %s1002_s16 }
  0x41   :  { %255 = vmatprep.subr.bf16.mxu0 %v916_v17  ;;  %815 = vmatpush3.bf16.msra.mxu1 %v927_v23 }
  0x42   :  { %816 = vmatprep.subr.bf16.mxu1 %v1060_v0  ;;  %p1009_p5 = por %p1008_p4, %p1007_p3 }
  0x44   :  { %256 = vmatpush1.bf16.msra.mxu0 %v918_v19  ;;  %p1010_p6 = pnand %p1009_p5, %p1003_p2 }
  0x45   :  { %257 = vmatprep.subr.bf16.mxu0 %v919_v20  ;;  %817 = vmatpush3.bf16.msra.mxu1 %v928_v26 }
  0x46   :  { %818 = vmatprep.subr.bf16.mxu1 %v1060_v0 }
  0x48   :  { %258 = vmatpush1.bf16.msra.mxu0 %v921_v22 }
  0x49   :  { %824 = vmatprep.subr.bf16.mxu0 %v1060_v0  ;;  %819 = vmatpush3.bf16.msra.mxu1 %v929_v28  ;;  %v759_v28 = vld [vmem:[%s1280_s8] ss:$0 sm:$0xff]  ;;  %s1065_s8 = smov [#allocation8]  }
  0x4a   :  { %844 = vmatprep.subr.bf16.mxu1 %v1060_v0  ;;  %s703_s15 = sshll.u32 %s1065_s8, 4  ;;  %s704_s15 = int_to_ptr.vmem [resolvable:$true] %s703_s15 }
  0x4b   :  { %276 = vmatmul.mubr.bf16.vlgmr.msra.gmra.mrb[0].mxu0 %v65_v24 }
  0x4c   :  { %825 = vmatpush3.bf16.msra.mxu0 %v930_v25  ;;  %840 = vmatprep.mubr.msk.bf16.mxu0 %vm1062_vm0, %v1060_v0 }
  0x4d   :  { %826 = vmatprep.subr.bf16.mxu0 %v1060_v0  ;;  %821 = vmatmul.mubr.bf16.vlgmr.msra.gmra.mrb[0].mxu1 %v65_v24 }
  0x4e   :  { %845 = vmatpush3.bf16.msra.mxu1 %v931_v30  ;;  %860 = vmatprep.mubr.msk.bf16.mxu1 %vm1062_vm0, %v1060_v0 }
  0x4f   :  { %846 = vmatprep.subr.bf16.mxu1 %v1060_v0 }
  0x50   :  { %827 = vmatpush3.bf16.msra.mxu0 %v932_v27 }
  0x51   :  { %828 = vmatprep.subr.bf16.mxu0 %v1060_v0 }
  0x52   :  { %847 = vmatpush3.bf16.msra.mxu1 %v933_v32 }
  0x53   :  { %848 = vmatprep.subr.bf16.mxu1 %v1060_v0 }
  0x54   :  { %829 = vmatpush3.bf16.msra.mxu0 %v934_v29 }
  0x55   :  { %830 = vmatprep.subr.bf16.mxu0 %v1060_v0 }
  0x56   :  { %849 = vmatpush3.bf16.msra.mxu1 %v935_v34 }
  0x57   :  { %850 = vmatprep.subr.bf16.mxu1 %v1060_v0 }
  0x58   :  { %831 = vmatpush3.bf16.msra.mxu0 %v936_v31 }
  0x59   :  { %832 = vmatprep.subr.bf16.mxu0 %v1060_v0 }
  0x5a   :  { %851 = vmatpush3.bf16.msra.mxu1 %v937_v36 }
  0x5b   :  { %852 = vmatprep.subr.bf16.mxu1 %v1060_v0 }
  0x5c   :  { %833 = vmatpush3.bf16.msra.mxu0 %v938_v33 }
  0x5d   :  { %834 = vmatprep.subr.bf16.mxu0 %v1060_v0 }
  0x5e   :  { %853 = vmatpush3.bf16.msra.mxu1 %v939_v38 }
  0x5f   :  { %854 = vmatprep.subr.bf16.mxu1 %v1060_v0 }
  0x60   :  { %835 = vmatpush3.bf16.msra.mxu0 %v940_v35 }
  0x61   :  { %836 = vmatprep.subr.bf16.mxu0 %v1060_v0 }
  0x62   :  { %855 = vmatpush3.bf16.msra.mxu1 %v941_v39  ;;  %v1063_v39 = vmov 1  }
  0x63   :  { %856 = vmatprep.subr.bf16.mxu1 %v1060_v0 }
  0x64   :  { %837 = vmatpush3.bf16.msra.mxu0 %v942_v37 }
  0x65   :  { %838 = vmatprep.subr.bf16.mxu0 %v1060_v0 }
  0x66   :  { %857 = vmatpush3.bf16.msra.mxu1 %v943_v40 }
  0x67   :  { %858 = vmatprep.subr.bf16.mxu1 %v1060_v0 }
  0x68   :  { %839 = vmatpush3.bf16.msra.mxu0 %v944_v41 }
  0x69   :  { %864 = vmatprep.subr.bf16.mxu0 %v1060_v0 }
  0x6a   :  { %859 = vmatpush3.bf16.msra.mxu1 %v945_v42 }
 0x11e   :  { %v277_v50 = vpop.f32.mrb[0].mxu0 }
 0x11f   :  { %v278_v51 = vadd.f32 %v277_v50, %v103_v48  ;;  %v279_v52 = vpop.f32.mrb[1].mxu0 }
 0x120   :  { %v280_v53 = vadd.f32 %v279_v52, %v107_v49  ;;  %v281_v54 = vpop.f32.mrb[2].mxu0  ;;  %v318_v62 = vpop.f32.mrb[0].mxu1 }
 0x121   :  { %v324_v55 = vmax.f32 %v278_v51, 0.0  ;;  %v282_v56 = vpop.f32.mrb[3].mxu0  ;;  %v822_v63 = vpop.f32.mrb[1].mxu1  ;;  %v319_v9 = vadd.f32 %v318_v62, %v111_v7 }
 0x122   :  { %v325_v57 = vmax.f32 %v280_v53, 0.0  ;;  %v321_v2 = vpop.f32.mrb[2].mxu1 }
 0x123   :  { %v327_v59 = vpack.c.bf16 %v324_v55, %v324_v55  ;;  %v823_v3 = vpop.f32.mrb[3].mxu1  ;;  %v326_v11 = vmax.f32 %v319_v9, 0.0 }
 0x124   :  { %v328_v60 = vpack.c.bf16 %v325_v57, %v325_v57 }
 0x125   :  { %841 = vmatmul.mubr.bf16.vlgmr.msra.gmra.mrb[4].mxu0 %v327_v59  ;;  %v329_v13 = vpack.c.bf16 %v326_v11, %v326_v11 }
 0x126   :  { %865 = vmatpush3.bf16.msra.mxu0 %v946_v58  ;;  %861 = vmatmul.mubr.bf16.vlgmr.msra.gmra.mrb[4].mxu1 %v328_v60 }
 0x127   :  { %866 = vmatprep.subr.bf16.mxu0 %v1060_v0  ;;  %880 = vmatprep.mubr.msk.bf16.mxu0 %vm1062_vm0, %v1060_v0 }
 0x12a   :  { %867 = vmatpush3.bf16.msra.mxu0 %v947_v61 }
 0x12b   :  { %868 = vmatprep.subr.bf16.mxu0 %v1060_v0 }
 0x12e   :  { %869 = vmatpush3.bf16.msra.mxu0 %v948_v1 }
 0x12f   :  { %870 = vmatprep.subr.bf16.mxu0 %v1060_v0 }
 0x132   :  { %871 = vmatpush3.bf16.msra.mxu0 %v949_v4 }
 0x133   :  { %872 = vmatprep.subr.bf16.mxu0 %v1060_v0 }
 0x136   :  { %873 = vmatpush3.bf16.msra.mxu0 %v950_v6 }
 0x137   :  { %874 = vmatprep.subr.bf16.mxu0 %v1060_v0 }
 0x13a   :  { %875 = vmatpush3.bf16.msra.mxu0 %v951_v8 }
 0x13b   :  { %876 = vmatprep.subr.bf16.mxu0 %v1060_v0 }
 0x13e   :  { %877 = vmatpush3.bf16.msra.mxu0 %v952_v10 }
 0x13f   :  { %878 = vmatprep.subr.bf16.mxu0 %v1060_v0 }
 0x142   :  { %879 = vmatpush3.bf16.msra.mxu0 %v953_v12 }
 0x145   :  { %881 = vmatmul.mubr.bf16.vlgmr.msra.gmra.mrb[8].mxu0 %v329_v13 }
 0x1f8   :  { %v435_v16 = vpop.f32.mrb[4].mxu0 }
 0x1f9   :  { %v436_v17 = vadd.f32 %v741_v14, %v435_v16  ;;  %v842_v18 = vpop.f32.mrb[5].mxu0  ;;  %v547_v19 = vpop.f32.mrb[4].mxu1 }
 0x1fa   :  { %v548_v20 = vadd.f32 %v750_v15, %v547_v19  ;;  %v438_v21 = vpop.f32.mrb[6].mxu0  ;;  %v862_v22 = vpop.f32.mrb[5].mxu1 }
 0x1fb   :  { %v441_v23 = vmax.f32 %v436_v17, 0.0  ;;  %v843_v0 = vpop.f32.mrb[7].mxu0  ;;  %v550_v24 = vpop.f32.mrb[6].mxu1 }
 0x1fc   :  { %v553_v25 = vmax.f32 %v548_v20, 0.0  ;;  %v863_v26 = vpop.f32.mrb[7].mxu1 }
 0x1fe   :  { %v671_v27 = vsub.f32 %v441_v23, %v553_v25 }
 0x218   :  { %v659_v29 = vpop.f32.mrb[8].mxu0 }
 0x219   :  { %v660_v30 = vadd.f32 %v759_v28, %v659_v29  ;;  %v882_v31 = vpop.f32.mrb[9].mxu0 }
 0x21a   :  { %v662_v32 = vpop.f32.mrb[10].mxu0 }
 0x21b   :  { %v665_v33 = vsub.f32 0.0, %v660_v30  ;;  %v883_v34 = vpop.f32.mrb[11].mxu0 }
 0x21d   :  { %v666_v35 = vmul.f32 1.442695, %v665_v33 }
 0x21f   :  { %954 = vpow2.f32 %v666_v35 }
 0x229   :  { %v955_v36 = vpop.eup %954 }
 0x22a   :  { %v668_v37 = vadd.f32 1.0, %v955_v36 }
 0x22c   :  { %956 = vrcp.f32 %v668_v37 }
 0x236   :  { %v957_v38 = vpop.eup %956 }
 0x237   :  { %674 = vperm.xlu0 %896, %v957_v38  }
 0x23b   :  { %897 = vset.pattern.permute.xlu0 %v1063_v39 }
 0x23c   :  { %681 = vperm.xlu0 %897, %v957_v38  }
 0x2b6   :  { %v675_v40 = vpop.permute.xlu0 %674 }
 0x2b7   :  { %v677_v41 = vmul.f32 %v675_v40, %v671_v27 }
 0x2b9   :  { %v678_v42 = vadd.f32 %v677_v41, %v553_v25 }
 0x2bb   :  { %679 = vst [vmem:[#allocation7] sm:$0xff] %v678_v42  ;;  %v682_v43 = vpop.permute.xlu0 %681 }
 0x2bc   :  { %v684_v44 = vmul.f32 %v682_v43, %v671_v27 }
 0x2bd   :  { %1013 = shalt.err (!%p1010_p6)
}
 0x2be   :  { %s1014_s3 = scalar_lea.hbm %s1281_s9, 128 }
 0x2bf   :  { %p1015_p7 = scmp.ne.s32.totalorder %s1281_s9, %s1014_s3  ;;  %p1018_p8 = scmp.lt.u32.totalorder %s1014_s3, %s1281_s9 }
 0x2c1   :  { %p1020_p9 = pnand %p1018_p8, %p1015_p7 }
 0x2c3   :  { %1023 = shalt.err (!%p1020_p9)
}
 0x2c4   :  { %696 = dma.vmem_to_hbm [thread:$0]  %s694_s6, 128, %s1281_s9, [#allocation4]   ;;  %v685_v45 = vadd.f32 %v684_v44, %v553_v25 }
 0x2c5   :  { %s1024_s21 = scalar_lea.vmem %s704_s15, 128  ;;  %p1029_p11 = scmp.lt.s32.totalorder %s704_s15, %s704_s15 }
 0x2c6   :  { %686 = vst [vmem:[#allocation8] sm:$0xff] %v685_v45  ;;  %p1025_p10 = scmp.ne.s32.totalorder %s704_s15, %s1024_s21  ;;  %p1030_p12 = scmp.lt.s32.totalorder %s1024_s21, %s1024_s21 }
 0x2c8   :  { %p1031_p13 = por %p1030_p12, %p1029_p11 }
 0x2ca   :  { %p1032_p0 = pnand %p1031_p13, %p1025_p10 }
 0x2cc   :  { %1035 = shalt.err (!%p1032_p0)
}
 0x2cd   :  { %s1036_s24 = scalar_lea.hbm %s1282_s10, 128 }
 0x2ce   :  { %p1037_p1 = scmp.ne.s32.totalorder %s1282_s10, %s1036_s24  ;;  %p1040_p2 = scmp.lt.u32.totalorder %s1036_s24, %s1282_s10 }
 0x2d0   :  { %p1042_p3 = pnand %p1040_p2, %p1037_p1 }
 0x2d2   :  { %1045 = shalt.err (!%p1042_p3)
}
 0x2d3   :  { %706 = dma.vmem_to_hbm [thread:$0]  %s704_s15, 128, %s1282_s10, [#allocation9]  }
 0x2d4   :  { %1050 = dma.done.wait [#allocation4], 128  }
 0x2d5   :  { %1051 = vsyncadd [#allocation4], 4294967168 }
 0x2d6   :  { %1052 = dma.done.wait [#allocation9], 128  }
 0x2d7   :  { %1053 = vsyncadd [#allocation9], 4294967168 }
 0x2d8   :  { %713 = vsyncpa [#allocation3], 1 }
 0x2d9   :  { %714 = vsyncpa [#allocation6], 1 }
 0x2da   :  { %715 = vsyncpa [#allocation4], 1 }
 0x2db   :  { %716 = vsyncpa [#allocation9], 1 }

</bundles_post_ra>
